<compile_context>
chip_gen: v6e
topology: v6e:2x2x1
jax: 0.10.0
libtpu: 0.0.40
codegen_flags: <defaults>
</compile_context>

<pallas_src>
import jax
import jax.numpy as jnp
import numpy as np
from jax.experimental import pallas as pl
from jax.experimental.pallas import tpu as pltpu


def _round_up(x, m):
    return (x + m - 1) // m * m


def _cdiv(a, b):
    return (a + b - 1) // b


def _sublane_align(dtype):
    # Native second-minor tiling: f32 -> 8, bf16 -> 16, int8/fp8 -> 32.
    return max(8, 32 // np.dtype(dtype).itemsize)


def _choose_cols(total, max_cols):
    """Largest multiple-of-128 divisor of `total` (<= max_cols), preferring
    widths that leave at least 8 rows (full sublane utilization)."""
    best = None
    for k in range(max_cols // 128, 0, -1):
        c = 128 * k
        if total % c == 0:
            if best is None:
                best = c
            if total // c >= 8:
                return c
    return best


def _make_tick_kernel(block_r, c_lanes, s_rows, mask_rows):
    n_lane_tiles = c_lanes // 128
    n_fold = block_r // 8

    def kernel(thick_ref, target_ref, pred_ref, sse_ref, reg_ref):
        if mask_rows:
            i = pl.program_id(0)
            row = jax.lax.broadcasted_iota(jnp.int32, (block_r, 128), 0)
            valid = row < (s_rows - i * block_r)   # garbage rows of the ragged tail

        sse8 = jnp.zeros((8, 128), jnp.float32)
        reg8 = jnp.zeros((8, 128), jnp.float32)

        # Strip-mine the block over 128-lane slices: caps live temporaries at
        # ~(block_r, 128) regardless of block width; stores stay lane-dense.
        for c in range(n_lane_tiles):
            lo = c * 128
            t = thick_ref[:, lo:lo + 128].astype(jnp.float32)
            # Beer–Lambert absorption "render": pred = exp(-relu(thickness)).
            pred = jnp.exp(-jnp.maximum(t, 0.0))
            pred_ref[:, lo:lo + 128] = pred.astype(pred_ref.dtype)

            d = pred - target_ref[:, lo:lo + 128].astype(jnp.float32)
            dd = d * d
            tt = t * t
            if mask_rows:
                dd = jnp.where(valid, dd, 0.0)
                tt = jnp.where(valid, tt, 0.0)
            # Fold sublane groups into (8,128) vreg accumulators: pure VPU adds,
            # no XLU reduce, no VMEM scratch round-trips.
            for r in range(n_fold):
                ro = r * 8
                sse8 = sse8 + dd[ro:ro + 8, :]
                reg8 = reg8 + tt[ro:ro + 8, :]

        sse_ref[...] = sse8
        reg_ref[...] = reg8

    return kernel


def trainer_tick(thickness, target, it, *, pred_dtype=jnp.bfloat16,
                 block_rows=256, block_cols=2048):
    """Pallas equivalent of Trainer.forward(target, it). Returns (loss, pred)."""
    assert thickness.shape == target.shape
    shape = target.shape
    total = int(np.prod(shape))

    # Flatten to a lane-dense 2-D slab (free reshape of contiguous data).
    thick_flat = thickness.reshape(total)
    target_flat = target.reshape(total)

    max_cols = max(128, _round_up(block_cols, 128))
    c_lanes = _choose_cols(total, max_cols)
    if c_lanes is None:
        # TODO(synk): element count not a multiple of 128 -> pad a tiny flat
        # tail (thickness=0, target=1 contribute exactly 0 to both loss terms).
        total_pad = _round_up(total, 128)
        thick_flat = jnp.pad(thick_flat, (0, total_pad - total))
        target_flat = jnp.pad(target_flat, (0, total_pad - total),
                              constant_values=1.0)
        c_lanes = _choose_cols(total_pad, max_cols)
    else:
        total_pad = total
    s_rows = total_pad // c_lanes

    # Row-block size: aligned to the native sublane tiling of every dtype
    # touched; prefer >= 2 row blocks so the single "parallel" grid axis can be
    # split across TensorCores (v7x megacore). Ragged last block is masked.
    row_align = max(_sublane_align(thick_flat.dtype),
                    _sublane_align(target_flat.dtype),
                    _sublane_align(pred_dtype))
    block_r = min(_round_up(max(block_rows, row_align), row_align),
                  _round_up(s_rows, row_align))
    if s_rows >= 2 * row_align and _cdiv(s_rows, block_r) < 2:
        block_r = _round_up(_cdiv(s_rows, 2), row_align)
    n_blocks = _cdiv(s_rows, block_r)
    mask_rows = (s_rows % block_r) != 0

    thick2d = thick_flat.reshape(s_rows, c_lanes)
    target2d = target_flat.reshape(s_rows, c_lanes)

    # Scoped VMEM: double-buffered inputs + pred output + tiny partial outputs,
    # plus headroom for compute temporaries. Clamp below v7x's 64 MiB physical.
    blk = block_r * c_lanes
    need = 2 * blk * (np.dtype(thick2d.dtype).itemsize
                      + np.dtype(target2d.dtype).itemsize
                      + np.dtype(pred_dtype).itemsize)
    need += 4 * (8 * 128 * 4) + (8 << 20)
    vmem_limit = int(min(max(need, 16 << 20), 48 << 20))

    kernel = _make_tick_kernel(block_r, c_lanes, s_rows, mask_rows)

    pred2d, sse_part, reg_part = pl.pallas_call(
        kernel,
        out_shape=(
            jax.ShapeDtypeStruct((s_rows, c_lanes), pred_dtype),     # rendered pred
            jax.ShapeDtypeStruct((n_blocks * 8, 128), jnp.float32),  # SSE partials
            jax.ShapeDtypeStruct((n_blocks * 8, 128), jnp.float32),  # L2 partials
        ),
        grid=(n_blocks,),
        in_specs=[
            pl.BlockSpec((block_r, c_lanes), lambda i: (i, 0)),
            pl.BlockSpec((block_r, c_lanes), lambda i: (i, 0)),
        ],
        out_specs=[
            pl.BlockSpec((block_r, c_lanes), lambda i: (i, 0)),
            pl.BlockSpec((8, 128), lambda i: (i, 0)),
            pl.BlockSpec((8, 128), lambda i: (i, 0)),
        ],
        compiler_params=pltpu.CompilerParams(
            dimension_semantics=("parallel",),
            vmem_limit_bytes=vmem_limit,
        ),
    )(thick2d, target2d)

    # Tiny scalar epilogue in JAX; the `it` ramp works for concrete ints and
    # traced scalars alike.
    w = jnp.float32(0.1) * jnp.minimum(
        jnp.float32(1.0), jnp.asarray(it, jnp.float32) * jnp.float32(0.01))
    loss = (jnp.sum(sse_part) + w * jnp.sum(reg_part)) / jnp.float32(total)

    pred_flat = pred2d.reshape(total_pad)
    if total_pad != total:
        pred_flat = pred_flat[:total]
    pred = pred_flat.reshape(shape)
    return loss, pred


def trainer_tick_ref(thickness, target, it):
    pred = jnp.exp(-jnp.maximum(thickness, 0.0))
    w = 0.1 * min(1.0, it / 100.0)
    loss = jnp.mean((pred - target) ** 2) + w * jnp.mean(thickness ** 2)
    return loss, pred


def _run_case(shape, it, *, pred_dtype=jnp.float32, block_rows=256,
              block_cols=2048, pred_atol=1e-5, pred_rtol=1e-5):
    key = jax.random.PRNGKey(0)
    k_thick, k_target = jax.random.split(key)
    thickness = jax.random.uniform(k_thick, shape, jnp.float32,
                                   minval=0.0, maxval=2.0)
    target = jax.random.uniform(k_target, shape, jnp.float32)

    loss, pred = trainer_tick(thickness, target, it, pred_dtype=pred_dtype,
                              block_rows=block_rows, block_cols=block_cols)
    loss = jax.block_until_ready(loss)
    pred = jax.block_until_ready(pred)

    loss_ref, pred_ref = trainer_tick_ref(thickness, target, it)
    assert np.allclose(np.asarray(loss), np.asarray(loss_ref),
                       rtol=1e-5, atol=1e-6), (loss, loss_ref)
    assert np.allclose(np.asarray(pred, dtype=np.float32),
                       np.asarray(pred_ref),
                       rtol=pred_rtol, atol=pred_atol)


if __name__ == "__main__":
    # 1) Baseline small case (B=2, C=4, H=W=16): T=2048 -> (8, 256) slab, f32 pred.
    _run_case((2, 4, 16, 16), it=37)

    # 2) T=3200 -> (25, 128) slab: two parallel row blocks with an in-kernel
    #    row mask on the ragged last block (no host pad, no output slice).
    _run_case((4, 4, 10, 20), it=250, block_rows=16)

    # 3) bf16 prediction writeback (halves pred HBM traffic); loss stays f32.
    _run_case((2, 4, 16, 16), it=7, pred_dtype=jnp.bfloat16,
              pred_atol=8e-3, pred_rtol=1e-2)

    # 4) Element count not a multiple of 128: exercises the tiny tail-pad
    #    fallback plus the row mask (single partially-valid row block).
    _run_case((1, 1, 9, 9), it=120)

    print("KERNEL_OK")
</pallas_src>

<mosaic_0001>
module attributes {stable_mosaic.version = 11 : i64} {
  func.func @kernel(%arg0: i32, %arg1: memref<8x256xf32, #tpu.memory_space<vmem>>, %arg2: memref<8x256xf32, #tpu.memory_space<vmem>>, %arg3: memref<8x256xf32, #tpu.memory_space<vmem>>, %arg4: memref<8x128xf32, #tpu.memory_space<vmem>>, %arg5: memref<8x128xf32, #tpu.memory_space<vmem>>) attributes {dimension_semantics = [#tpu.dimension_semantics<parallel>], iteration_bounds = array<i64: 1>, scalar_prefetch = 0 : i64, scratch_operands = 0 : i64, tpu.core_type = #tpu.core_type<tc>, window_params = [{transform_indices = @transform_0, window_bounds = array<i64: 8, 256>}, {transform_indices = @transform_1, window_bounds = array<i64: 8, 256>}, {transform_indices = @transform_2, window_bounds = array<i64: 8, 256>}, {transform_indices = @transform_3, window_bounds = array<i64: 8, 128>}, {transform_indices = @transform_4, window_bounds = array<i64: 8, 128>}]} {
    %cst = arith.constant 0.000000e+00 : f32
    %0 = vector.broadcast %cst : f32 to vector<8x128xf32>
    %cst_0 = arith.constant 0.000000e+00 : f32
    %1 = vector.broadcast %cst_0 : f32 to vector<8x128xf32>
    %c0 = arith.constant 0 : index
    %c0_1 = arith.constant 0 : index
    %2 = vector.load %arg1[%c0, %c0_1] : memref<8x256xf32, #tpu.memory_space<vmem>>, vector<8x128xf32>
    %cst_2 = arith.constant 0.000000e+00 : f32
    %3 = vector.broadcast %cst_2 : f32 to vector<8x128xf32>
    %4 = arith.maximumf %2, %3 : vector<8x128xf32>
    %cst_3 = arith.constant 0.000000e+00 : f32
    %5 = vector.broadcast %cst_3 : f32 to vector<8x128xf32>
    %6 = arith.subf %5, %4 : vector<8x128xf32>
    %7 = math.exp %6 : vector<8x128xf32>
    %c0_4 = arith.constant 0 : index
    %c0_5 = arith.constant 0 : index
    %8 = vector.load %arg3[%c0_4, %c0_5] : memref<8x256xf32, #tpu.memory_space<vmem>>, vector<8x128xf32>
    tpu.vector_store %arg3[%c0_4, %c0_5], %7 {strides = array<i32>} : memref<8x256xf32, #tpu.memory_space<vmem>>, vector<8x128xf32>,
    %c0_6 = arith.constant 0 : index
    %c0_7 = arith.constant 0 : index
    %9 = vector.load %arg2[%c0_6, %c0_7] : memref<8x256xf32, #tpu.memory_space<vmem>>, vector<8x128xf32>
    %10 = arith.subf %7, %9 : vector<8x128xf32>
    %11 = arith.mulf %10, %10 : vector<8x128xf32>
    %12 = arith.mulf %2, %2 : vector<8x128xf32>
    %13 = arith.addf %0, %11 : vector<8x128xf32>
    %14 = arith.addf %1, %12 : vector<8x128xf32>
    %c0_8 = arith.constant 0 : index
    %c128 = arith.constant 128 : index
    %15 = vector.load %arg1[%c0_8, %c128] : memref<8x256xf32, #tpu.memory_space<vmem>>, vector<8x128xf32>
    %cst_9 = arith.constant 0.000000e+00 : f32
    %16 = vector.broadcast %cst_9 : f32 to vector<8x128xf32>
    %17 = arith.maximumf %15, %16 : vector<8x128xf32>
    %cst_10 = arith.constant 0.000000e+00 : f32
    %18 = vector.broadcast %cst_10 : f32 to vector<8x128xf32>
    %19 = arith.subf %18, %17 : vector<8x128xf32>
    %20 = math.exp %19 : vector<8x128xf32>
    %c0_11 = arith.constant 0 : index
    %c128_12 = arith.constant 128 : index
    %21 = vector.load %arg3[%c0_11, %c128_12] : memref<8x256xf32, #tpu.memory_space<vmem>>, vector<8x128xf32>
    tpu.vector_store %arg3[%c0_11, %c128_12], %20 {strides = array<i32>} : memref<8x256xf32, #tpu.memory_space<vmem>>, vector<8x128xf32>,
    %c0_13 = arith.constant 0 : index
    %c128_14 = arith.constant 128 : index
    %22 = vector.load %arg2[%c0_13, %c128_14] : memref<8x256xf32, #tpu.memory_space<vmem>>, vector<8x128xf32>
    %23 = arith.subf %20, %22 : vector<8x128xf32>
    %24 = arith.mulf %23, %23 : vector<8x128xf32>
    %25 = arith.mulf %15, %15 : vector<8x128xf32>
    %26 = arith.addf %13, %24 : vector<8x128xf32>
    %27 = arith.addf %14, %25 : vector<8x128xf32>
    %c0_15 = arith.constant 0 : index
    %c0_16 = arith.constant 0 : index
    %28 = vector.load %arg4[%c0_15, %c0_16] : memref<8x128xf32, #tpu.memory_space<vmem>>, vector<8x128xf32>
    tpu.vector_store %arg4[%c0_15, %c0_16], %26 {strides = array<i32>} : memref<8x128xf32, #tpu.memory_space<vmem>>, vector<8x128xf32>,
    %c0_17 = arith.constant 0 : index
    %c0_18 = arith.constant 0 : index
    %29 = vector.load %arg5[%c0_17, %c0_18] : memref<8x128xf32, #tpu.memory_space<vmem>>, vector<8x128xf32>
    tpu.vector_store %arg5[%c0_17, %c0_18], %27 {strides = array<i32>} : memref<8x128xf32, #tpu.memory_space<vmem>>, vector<8x128xf32>,
    return
  }
  func.func @transform_0(%arg0: i32) -> (i32, i32) {
    %c0_i32 = arith.constant 0 : i32
    %c0_i32_0 = arith.constant 0 : i32
    return %arg0, %c0_i32 : i32, i32
  }
  func.func @transform_1(%arg0: i32) -> (i32, i32) {
    %c0_i32 = arith.constant 0 : i32
    %c0_i32_0 = arith.constant 0 : i32
    return %arg0, %c0_i32 : i32, i32
  }
  func.func @transform_2(%arg0: i32) -> (i32, i32) {
    %c0_i32 = arith.constant 0 : i32
    %c0_i32_0 = arith.constant 0 : i32
    return %arg0, %c0_i32 : i32, i32
  }
  func.func @transform_3(%arg0: i32) -> (i32, i32) {
    %c0_i32 = arith.constant 0 : i32
    %c0_i32_0 = arith.constant 0 : i32
    return %arg0, %c0_i32 : i32, i32
  }
  func.func @transform_4(%arg0: i32) -> (i32, i32) {
    %c0_i32 = arith.constant 0 : i32
    %c0_i32_0 = arith.constant 0 : i32
    return %arg0, %c0_i32 : i32, i32
  }
}

</mosaic_0001>

<bundles_post_ra>
// kernel: tpu_custom_call.1
= control target key start
LH: loop header
LB: loop body
LE: loop exit
PB: predicated region body
PF: predicated region fallthrough
CT: control target
= control target key end

     0   :  { %10 = vsyncpa [#allocation3], 0  ;;  %s271_s0 = inlined_call_operand.hbm [shape: f32[8,256], index: 0, kind: input, shape index: {}]   ;;  %s272_s1 = inlined_call_operand.hbm [shape: f32[8,256], index: 1, kind: input, shape index: {}]   ;;  %s273_s2 = inlined_call_operand.hbm [shape: f32[8,256], index: 2, kind: output, shape index: {0}]   ;;  %s274_s3 = inlined_call_operand.hbm [shape: f32[8,128], index: 3, kind: output, shape index: {1}]   ;;  %s275_s4 = inlined_call_operand.hbm [shape: f32[8,128], index: 4, kind: output, shape index: {2}]  }
   0x1   :  { %11 = vsyncpa [#allocation6], 0 }
   0x2   :  { %12 = vsyncpa [#allocation4], 0 }
   0x3   :  { %13 = vsyncpa [#allocation9], 0  ;;  %s226_s15 = smov [#allocation2]   ;;  %s227_s17 = smov [#allocation5]  }
   0x4   :  { %s20_s16 = sshll.u32 %s226_s15, 4  ;;  %s30_s18 = sshll.u32 %s227_s17, 4  ;;  %s21_s16 = int_to_ptr.vmem [resolvable:$true] %s20_s16  ;;  %s31_s18 = int_to_ptr.vmem [resolvable:$true] %s30_s18 }
   0x5   :  { %s126_s19 = scalar_lea.vmem %s21_s16, 256  ;;  %p131_p1 = scmp.lt.s32.totalorder %s21_s16, %s21_s16 }
   0x6   :  { %p127_p0 = scmp.ne.s32.totalorder %s21_s16, %s126_s19  ;;  %p132_p2 = scmp.lt.s32.totalorder %s126_s19, %s126_s19 }
   0x8   :  { %p133_p3 = por %p132_p2, %p131_p1 }
   0xa   :  { %p134_p4 = pnand %p133_p3, %p127_p0 }
   0xc   :  { %137 = shalt.err (!%p134_p4)
}
   0xd   :  { %23 = dma.hbm_to_vmem [thread:$0]  %s271_s0, 256, %s21_s16, [#allocation3]  }
   0xe   :  { %s146_s22 = scalar_lea.vmem %s31_s18, 256  ;;  %p151_p6 = scmp.lt.s32.totalorder %s31_s18, %s31_s18 }
   0xf   :  { %p147_p5 = scmp.ne.s32.totalorder %s31_s18, %s146_s22  ;;  %p152_p7 = scmp.lt.s32.totalorder %s146_s22, %s146_s22 }
  0x11   :  { %p153_p8 = por %p152_p7, %p151_p6 }
  0x13   :  { %p154_p9 = pnand %p153_p8, %p147_p5 }
  0x15   :  { %157 = shalt.err (!%p154_p9)
}
  0x16   :  { %33 = dma.hbm_to_vmem [thread:$0]  %s272_s1, 256, %s31_s18, [#allocation6]  }
  0x17   :  { %218 = dma.done.wait [#allocation3], 256  }
  0x18   :  { %219 = vsyncadd [#allocation3], 4294967040 }
  0x19   :  { %220 = dma.done.wait [#allocation6], 256  }
  0x1a   :  { %221 = vsyncadd [#allocation6], 4294967040  ;;  %v40_v0 = vld [vmem:[#allocation2] sm:$0xff]  ;;  %v52_v1 = vld [vmem:[#allocation2 + $0x8] sm:$0xff]  ;;  %s228_s0 = smov [#allocation7]   ;;  %s229_s25 = smov [#allocation8]  }
  0x1b   :  { %v41_v2 = vmax.f32 %v40_v0, 0.0  ;;  %v53_v3 = vmax.f32 %v52_v1, 0.0  ;;  %v49_v4 = vmul.f32 %v40_v0, %v40_v0  ;;  %v61_v5 = vmul.f32 %v52_v1, %v52_v1  ;;  %s72_s1 = sshll.u32 %s228_s0, 4  ;;  %v46_v11 = vld [vmem:[#allocation5] sm:$0xff]  ;;  %v58_v12 = vld [vmem:[#allocation5 + $0x8] sm:$0xff]  ;;  %s82_s26 = sshll.u32 %s229_s25, 4  ;;  %s73_s1 = int_to_ptr.vmem [resolvable:$true] %s72_s1  ;;  %s83_s26 = int_to_ptr.vmem [resolvable:$true] %s82_s26 }
  0x1c   :  { %s158_s27 = scalar_lea.vmem %s73_s1, 256  ;;  %p163_p11 = scmp.lt.s32.totalorder %s73_s1, %s73_s1 }
  0x1d   :  { %v42_v6 = vsub.f32 0.0, %v41_v2  ;;  %v54_v7 = vsub.f32 0.0, %v53_v3  ;;  %v63_v8 = vadd.f32 %v61_v5, %v49_v4  ;;  %p159_p10 = scmp.ne.s32.totalorder %s73_s1, %s158_s27  ;;  %p164_p12 = scmp.lt.s32.totalorder %s158_s27, %s158_s27 }
  0x1f   :  { %v43_v9 = vmul.f32 1.442695, %v42_v6  ;;  %v55_v10 = vmul.f32 1.442695, %v54_v7  ;;  %65 = vst [vmem:[#allocation10] sm:$0xff] %v63_v8  ;;  %p165_p13 = por %p164_p12, %p163_p11 }
  0x21   :  { %114 = vpow2.f32 %v43_v9  ;;  %p166_p0 = pnand %p165_p13, %p159_p10 }
  0x22   :  { %116 = vpow2.f32 %v55_v10 }
  0x2e   :  { %v115_v13 = vpop.eup %114 }
  0x2f   :  { %v117_v14 = vpop.eup %116  ;;  %v47_v15 = vsub.f32 %v115_v13, %v46_v11  ;;  %45 = vst [vmem:[#allocation7] sm:$0xff] %v115_v13 }
  0x30   :  { %v59_v16 = vsub.f32 %v117_v14, %v58_v12  ;;  %57 = vst [vmem:[#allocation7 + $0x8] sm:$0xff] %v117_v14 }
  0x31   :  { %v48_v17 = vmul.f32 %v47_v15, %v47_v15 }
  0x32   :  { %169 = shalt.err (!%p166_p0)
}
  0x33   :  { %75 = dma.vmem_to_hbm [thread:$0]  %s73_s1, 256, %s273_s2, [#allocation4]   ;;  %v60_v18 = vmul.f32 %v59_v16, %v59_v16 }
  0x34   :  { %s230_s30 = smov [#allocation10]   ;;  %s178_s6 = scalar_lea.vmem %s83_s26, 128 }
  0x35   :  { %s92_s5 = sshll.u32 %s230_s30, 4  ;;  %v62_v19 = vadd.f32 %v60_v18, %v48_v17  ;;  %p179_p1 = scmp.ne.s32.totalorder %s83_s26, %s178_s6  ;;  %s93_s5 = int_to_ptr.vmem [resolvable:$true] %s92_s5 }
  0x36   :  { %p183_p2 = scmp.lt.s32.totalorder %s83_s26, %s83_s26  ;;  %p184_p3 = scmp.lt.s32.totalorder %s178_s6, %s178_s6 }
  0x37   :  { %64 = vst [vmem:[#allocation8] sm:$0xff] %v62_v19 }
  0x38   :  { %p185_p4 = por %p184_p3, %p183_p2 }
  0x3a   :  { %p186_p5 = pnand %p185_p4, %p179_p1 }
  0x3c   :  { %189 = shalt.err (!%p186_p5)
}
  0x3d   :  { %85 = dma.vmem_to_hbm [thread:$0]  %s83_s26, 128, %s274_s3, [#allocation9]  }
  0x3e   :  { %s198_s9 = scalar_lea.vmem %s93_s5, 128  ;;  %p203_p7 = scmp.lt.s32.totalorder %s93_s5, %s93_s5 }
  0x3f   :  { %p199_p6 = scmp.ne.s32.totalorder %s93_s5, %s198_s9  ;;  %p204_p8 = scmp.lt.s32.totalorder %s198_s9, %s198_s9 }
  0x41   :  { %p205_p9 = por %p204_p8, %p203_p7 }
  0x43   :  { %p206_p10 = pnand %p205_p9, %p199_p6 }
  0x45   :  { %209 = shalt.err (!%p206_p10)
}
  0x46   :  { %95 = dma.vmem_to_hbm [thread:$0]  %s93_s5, 128, %s275_s4, [#allocation9]  }
  0x47   :  { %222 = dma.done.wait [#allocation4], 256  }
  0x48   :  { %223 = vsyncadd [#allocation4], 4294967040 }
  0x49   :  { %224 = dma.done.wait [#allocation9], 256  }
  0x4a   :  { %225 = vsyncadd [#allocation9], 4294967040 }
  0x4b   :  { %105 = vsyncpa [#allocation3], 1 }
  0x4c   :  { %106 = vsyncpa [#allocation6], 1 }
  0x4d   :  { %107 = vsyncpa [#allocation4], 1 }
  0x4e   :  { %108 = vsyncpa [#allocation9], 1 }

</bundles_post_ra>
